<compile_context>
chip_gen: v7x
topology: tpu7x:2x2x1
jax: 0.10.0
libtpu: 0.0.40
codegen_flags: <defaults>
</compile_context>

<pallas_src>
import functools
import math

import jax
import jax.numpy as jnp
from jax.experimental import pallas as pl
from jax.experimental.pallas import tpu as pltpu


def transformer_kernel(
    x_ref,        # (B*S, F)   f32
    w_in_ref,     # (F, D)     bf16
    w_dd_ref,     # (4, D, D)  bf16   [wq*scale, wk, wv, wo]
    w1_ref,       # (D, d_ffn) bf16
    w2_ref,       # (d_ffn, D) bf16
    vecs_ref,     # (10, D)    f32    [b_in, bq*scale, bk, bv, bo, g1, beta1, b2, g2, beta2]
    b1_ref,       # (1, d_ffn) f32
    o_ref,        # (B*S, D)   f32
    *,
    batch,
    seq,
):
    eps = 1e-5
    f32 = jnp.float32
    bf16 = jnp.bfloat16
    D = w_in_ref.shape[1]

    # One load of the packed vector slab; static row slices (hoisted, reused).
    vecs = vecs_ref[...]
    b_in, bq, bk, bv, bo = vecs[0], vecs[1], vecs[2], vecs[3], vecs[4]
    g1, beta1, b2, g2, beta2 = vecs[5], vecs[6], vecs[7], vecs[8], vecs[9]
    b1 = b1_ref[...]

    x = x_ref[...]                                               # (M, F) f32

    # nn.Linear(n_units_in, D) + ReLU (bf16 MXU operands, f32 accumulate).
    # TODO(synk): K=4 contraction leaves the MXU pass mostly idle; negligible at M=16.
    h = jnp.dot(x.astype(bf16), w_in_ref[...], preferred_element_type=f32) + b_in
    h = jnp.maximum(h, 0.0)                                      # (M, D) f32
    hb = h.astype(bf16)

    # Single-head self-attention: separate lane-aligned (D,D) projections.
    # 1/sqrt(D) already folded into w_dd[0] / bq.
    q = jnp.dot(hb, w_dd_ref[0], preferred_element_type=f32) + bq   # (M, D) pre-scaled
    k = jnp.dot(hb, w_dd_ref[1], preferred_element_type=f32) + bk
    v = jnp.dot(hb, w_dd_ref[2], preferred_element_type=f32) + bv

    # Restore batch structure only for the two attention contractions
    # (reshape splits the sublane dim at an 8-row boundary: cheap).
    q3 = q.reshape(batch, seq, D).astype(bf16)
    k3 = k.reshape(batch, seq, D).astype(bf16)
    v3 = v.reshape(batch, seq, D).astype(bf16)

    scores = jnp.einsum("bqd,bkd->bqk", q3, k3,
                        preferred_element_type=f32)              # (B, S, S) f32

    # Numerically stable softmax in f32; reciprocal on the EUP (otherwise idle).
    m = jnp.max(scores, axis=-1, keepdims=True)
    p = jnp.exp(scores - m)
    p = p * pl.reciprocal(jnp.sum(p, axis=-1, keepdims=True), approx=True)

    attn = jnp.einsum("bqk,bkd->bqd", p.astype(bf16), v3,
                      preferred_element_type=f32)                # (B, S, D) f32
    attn = attn.reshape(batch * seq, D)
    attn = jnp.dot(attn.astype(bf16), w_dd_ref[3],
                   preferred_element_type=f32) + bo              # (M, D) f32

    # TODO(synk): dropout (p=0.1) omitted — identity in eval mode.
    # Residual + LayerNorm1 (post-norm, PyTorch default norm_first=False), f32.
    y = h + attn
    mu = jnp.mean(y, axis=-1, keepdims=True)
    var = jnp.mean((y - mu) ** 2, axis=-1, keepdims=True)
    y = (y - mu) * jax.lax.rsqrt(var + eps) * g1 + beta1

    # Feed-forward: Linear(D, d_ffn) -> ReLU -> Linear(d_ffn, D).
    f = jnp.dot(y.astype(bf16), w1_ref[...], preferred_element_type=f32) + b1
    f = jnp.maximum(f, 0.0)
    f = jnp.dot(f.astype(bf16), w2_ref[...], preferred_element_type=f32) + b2

    # Residual + LayerNorm2.
    z = y + f
    mu2 = jnp.mean(z, axis=-1, keepdims=True)
    var2 = jnp.mean((z - mu2) ** 2, axis=-1, keepdims=True)
    z = (z - mu2) * jax.lax.rsqrt(var2 + eps) * g2 + beta2

    # Trailing nn.ReLU().
    o_ref[...] = jnp.maximum(z, 0.0)


def transformer_forward(x, params):
    B, S, F = x.shape
    D = params["w_in"].shape[1]

    # Collapse (B,S) -> M in the wrapper (free XLA reshape); kernel works on 2D slabs.
    x2d = x.reshape(B * S, F)
    args = (
        x2d,
        params["w_in"], params["w_dd"], params["w1"], params["w2"],
        params["vecs"], params["b1"],
    )

    # Single gridless invocation: total payload ~70 KiB, everything resident in VMEM.
    vmem_spec = pl.BlockSpec(memory_space=pltpu.MemorySpace.VMEM)
    out2d = pl.pallas_call(
        functools.partial(transformer_kernel, batch=B, seq=S),
        out_shape=jax.ShapeDtypeStruct((B * S, D), jnp.float32),
        in_specs=[vmem_spec] * len(args),
        out_specs=vmem_spec,
    )(*args)
    return out2d.reshape(B, S, D)


def make_params(key, n_units_in, n_units_hidden, d_ffn):
    ks = jax.random.split(key, 12)
    s = 0.05
    f32, bf16 = jnp.float32, jnp.bfloat16
    D = n_units_hidden
    scale = 1.0 / math.sqrt(D)

    w_in = s * jax.random.normal(ks[0], (n_units_in, D), f32)
    b_in = s * jax.random.normal(ks[1], (D,), f32)
    wq = s * jax.random.normal(ks[2], (D, D), f32)
    wk = s * jax.random.normal(ks[3], (D, D), f32)
    wv = s * jax.random.normal(ks[4], (D, D), f32)
    bq = s * jax.random.normal(ks[5], (D,), f32)
    bk = s * jax.random.normal(ks[6], (D,), f32)
    bv = s * jax.random.normal(ks[7], (D,), f32)
    wo = s * jax.random.normal(ks[8], (D, D), f32)
    bo = s * jax.random.normal(ks[9], (D,), f32)
    w1 = s * jax.random.normal(ks[10], (D, d_ffn), f32)
    w2 = s * jax.random.normal(ks[11], (d_ffn, D), f32)

    # Fold the 1/sqrt(D) attention scale into the Q projection (nhead=1 so head_dim=D).
    wq = wq * scale
    bq = bq * scale

    # bf16 weight slabs (MXU operands, pre-transposed for x @ W); one f32 vector slab
    # for all small per-channel params (biases + LayerNorm gamma/beta).
    w_dd = jnp.stack([wq, wk, wv, wo], axis=0).astype(bf16)          # (4, D, D)
    vecs = jnp.stack(
        [b_in, bq, bk, bv, bo,
         jnp.ones((D,), f32), jnp.zeros((D,), f32),    # g1, beta1
         jnp.zeros((D,), f32),                         # b2
         jnp.ones((D,), f32), jnp.zeros((D,), f32)],   # g2, beta2
        axis=0)                                                      # (10, D)

    return {
        "w_in": w_in.astype(bf16),        # (F, D)
        "w_dd": w_dd,                     # (4, D, D)
        "w1": w1.astype(bf16),            # (D, d_ffn)
        "w2": w2.astype(bf16),            # (d_ffn, D)
        "vecs": vecs,                     # (10, D) f32
        "b1": jnp.zeros((1, d_ffn), f32), # (1, d_ffn)
    }


if __name__ == "__main__":
    B, S = 2, 8                       # batch, seq_len
    n_units_in = 4
    n_units_hidden = 64
    d_ffn = 128

    key = jax.random.PRNGKey(0)
    kx, kp = jax.random.split(key)
    x = jax.random.normal(kx, (B, S, n_units_in), jnp.float32)
    params = make_params(kp, n_units_in, n_units_hidden, d_ffn)

    out = transformer_forward(x, params)
    out = jax.block_until_ready(out)

    assert out.shape == (B, S, n_units_hidden), out.shape
    assert bool(jnp.all(jnp.isfinite(out)))
    assert bool(jnp.all(out >= 0.0))  # final ReLU
    print("KERNEL_OK")
</pallas_src>

<mosaic_0001>
module attributes {stable_mosaic.version = 11 : i64} {
  func.func @transformer_kernel(%arg0: memref<16x4xf32, #tpu.memory_space<vmem>>, %arg1: memref<4x64xbf16, #tpu.memory_space<vmem>>, %arg2: memref<4x64x64xbf16, #tpu.memory_space<vmem>>, %arg3: memref<64x128xbf16, #tpu.memory_space<vmem>>, %arg4: memref<128x64xbf16, #tpu.memory_space<vmem>>, %arg5: memref<10x64xf32, #tpu.memory_space<vmem>>, %arg6: memref<1x128xf32, #tpu.memory_space<vmem>>, %arg7: memref<16x64xf32, #tpu.memory_space<vmem>>) attributes {dimension_semantics = [], scalar_prefetch = 0 : i64, scratch_operands = 0 : i64, tpu.core_type = #tpu.core_type<tc>} {
    %c0 = arith.constant 0 : index
    %c0_0 = arith.constant 0 : index
    %0 = vector.load %arg5[%c0, %c0_0] : memref<10x64xf32, #tpu.memory_space<vmem>>, vector<10x64xf32>
    %1 = vector.extract_strided_slice %0 {offsets = [0, 0], sizes = [1, 64], strides = [1, 1]} : vector<10x64xf32> to vector<1x64xf32>
    %2 = vector.shape_cast %1 : vector<1x64xf32> to vector<64xf32>
    %3 = vector.extract_strided_slice %0 {offsets = [1, 0], sizes = [1, 64], strides = [1, 1]} : vector<10x64xf32> to vector<1x64xf32>
    %4 = vector.shape_cast %3 : vector<1x64xf32> to vector<64xf32>
    %5 = vector.extract_strided_slice %0 {offsets = [2, 0], sizes = [1, 64], strides = [1, 1]} : vector<10x64xf32> to vector<1x64xf32>
    %6 = vector.shape_cast %5 : vector<1x64xf32> to vector<64xf32>
    %7 = vector.extract_strided_slice %0 {offsets = [3, 0], sizes = [1, 64], strides = [1, 1]} : vector<10x64xf32> to vector<1x64xf32>
    %8 = vector.shape_cast %7 : vector<1x64xf32> to vector<64xf32>
    %9 = vector.extract_strided_slice %0 {offsets = [4, 0], sizes = [1, 64], strides = [1, 1]} : vector<10x64xf32> to vector<1x64xf32>
    %10 = vector.shape_cast %9 : vector<1x64xf32> to vector<64xf32>
    %11 = vector.extract_strided_slice %0 {offsets = [5, 0], sizes = [1, 64], strides = [1, 1]} : vector<10x64xf32> to vector<1x64xf32>
    %12 = vector.shape_cast %11 : vector<1x64xf32> to vector<64xf32>
    %13 = vector.extract_strided_slice %0 {offsets = [6, 0], sizes = [1, 64], strides = [1, 1]} : vector<10x64xf32> to vector<1x64xf32>
    %14 = vector.shape_cast %13 : vector<1x64xf32> to vector<64xf32>
    %15 = vector.extract_strided_slice %0 {offsets = [7, 0], sizes = [1, 64], strides = [1, 1]} : vector<10x64xf32> to vector<1x64xf32>
    %16 = vector.shape_cast %15 : vector<1x64xf32> to vector<64xf32>
    %17 = vector.extract_strided_slice %0 {offsets = [8, 0], sizes = [1, 64], strides = [1, 1]} : vector<10x64xf32> to vector<1x64xf32>
    %18 = vector.shape_cast %17 : vector<1x64xf32> to vector<64xf32>
    %19 = vector.extract_strided_slice %0 {offsets = [9, 0], sizes = [1, 64], strides = [1, 1]} : vector<10x64xf32> to vector<1x64xf32>
    %20 = vector.shape_cast %19 : vector<1x64xf32> to vector<64xf32>
    %c0_1 = arith.constant 0 : index
    %c0_2 = arith.constant 0 : index
    %21 = vector.load %arg6[%c0_1, %c0_2] : memref<1x128xf32, #tpu.memory_space<vmem>>, vector<1x128xf32>
    %c0_3 = arith.constant 0 : index
    %c0_4 = arith.constant 0 : index
    %22 = vector.load %arg0[%c0_3, %c0_4] : memref<16x4xf32, #tpu.memory_space<vmem>>, vector<16x4xf32>
    %23 = arith.truncf %22 : vector<16x4xf32> to vector<16x4xbf16>
    %c0_5 = arith.constant 0 : index
    %c0_6 = arith.constant 0 : index
    %24 = vector.load %arg1[%c0_5, %c0_6] : memref<4x64xbf16, #tpu.memory_space<vmem>>, vector<4x64xbf16>
    %cst = arith.constant dense<0.000000e+00> : vector<16x64xf32>
    %25 = tpu.matmul %23, %24, %cst {dimension_numbers = #tpu.dot_dimension_numbers<[1], [0], [0], [1], [0, 0, 1, 1], [], []>} : vector<16x4xbf16>, vector<4x64xbf16>, vector<16x64xf32> -> vector<16x64xf32>
    %26 = vector.shape_cast %2 : vector<64xf32> to vector<1x64xf32>
    %27 = vector.broadcast %26 : vector<1x64xf32> to vector<16x64xf32>
    %28 = arith.addf %25, %27 : vector<16x64xf32>
    %cst_7 = arith.constant 0.000000e+00 : f32
    %29 = vector.broadcast %cst_7 : f32 to vector<16x64xf32>
    %30 = arith.maximumf %28, %29 : vector<16x64xf32>
    %31 = arith.truncf %30 : vector<16x64xf32> to vector<16x64xbf16>
    %c0_8 = arith.constant 0 : index
    %c0_9 = arith.constant 0 : index
    %c0_10 = arith.constant 0 : index
    %32 = vector.load %arg2[%c0_8, %c0_9, %c0_10] : memref<4x64x64xbf16, #tpu.memory_space<vmem>>, vector<1x64x64xbf16>
    %33 = vector.shape_cast %32 : vector<1x64x64xbf16> to vector<64x64xbf16>
    %cst_11 = arith.constant dense<0.000000e+00> : vector<16x64xf32>
    %34 = tpu.matmul %31, %33, %cst_11 {dimension_numbers = #tpu.dot_dimension_numbers<[1], [0], [0], [1], [0, 0, 1, 1], [], []>} : vector<16x64xbf16>, vector<64x64xbf16>, vector<16x64xf32> -> vector<16x64xf32>
    %35 = vector.shape_cast %4 : vector<64xf32> to vector<1x64xf32>
    %36 = vector.broadcast %35 : vector<1x64xf32> to vector<16x64xf32>
    %37 = arith.addf %34, %36 : vector<16x64xf32>
    %c1 = arith.constant 1 : index
    %c0_12 = arith.constant 0 : index
    %c0_13 = arith.constant 0 : index
    %38 = vector.load %arg2[%c1, %c0_12, %c0_13] : memref<4x64x64xbf16, #tpu.memory_space<vmem>>, vector<1x64x64xbf16>
    %39 = vector.shape_cast %38 : vector<1x64x64xbf16> to vector<64x64xbf16>
    %cst_14 = arith.constant dense<0.000000e+00> : vector<16x64xf32>
    %40 = tpu.matmul %31, %39, %cst_14 {dimension_numbers = #tpu.dot_dimension_numbers<[1], [0], [0], [1], [0, 0, 1, 1], [], []>} : vector<16x64xbf16>, vector<64x64xbf16>, vector<16x64xf32> -> vector<16x64xf32>
    %41 = vector.shape_cast %6 : vector<64xf32> to vector<1x64xf32>
    %42 = vector.broadcast %41 : vector<1x64xf32> to vector<16x64xf32>
    %43 = arith.addf %40, %42 : vector<16x64xf32>
    %c2 = arith.constant 2 : index
    %c0_15 = arith.constant 0 : index
    %c0_16 = arith.constant 0 : index
    %44 = vector.load %arg2[%c2, %c0_15, %c0_16] : memref<4x64x64xbf16, #tpu.memory_space<vmem>>, vector<1x64x64xbf16>
    %45 = vector.shape_cast %44 : vector<1x64x64xbf16> to vector<64x64xbf16>
    %cst_17 = arith.constant dense<0.000000e+00> : vector<16x64xf32>
    %46 = tpu.matmul %31, %45, %cst_17 {dimension_numbers = #tpu.dot_dimension_numbers<[1], [0], [0], [1], [0, 0, 1, 1], [], []>} : vector<16x64xbf16>, vector<64x64xbf16>, vector<16x64xf32> -> vector<16x64xf32>
    %47 = vector.shape_cast %8 : vector<64xf32> to vector<1x64xf32>
    %48 = vector.broadcast %47 : vector<1x64xf32> to vector<16x64xf32>
    %49 = arith.addf %46, %48 : vector<16x64xf32>
    %50 = vector.shape_cast %37 : vector<16x64xf32> to vector<2x8x64xf32>
    %51 = arith.truncf %50 : vector<2x8x64xf32> to vector<2x8x64xbf16>
    %52 = vector.shape_cast %43 : vector<16x64xf32> to vector<2x8x64xf32>
    %53 = arith.truncf %52 : vector<2x8x64xf32> to vector<2x8x64xbf16>
    %54 = vector.shape_cast %49 : vector<16x64xf32> to vector<2x8x64xf32>
    %55 = arith.truncf %54 : vector<2x8x64xf32> to vector<2x8x64xbf16>
    "tpu.trace_start"() <{level = 10 : i32, message = "bqd,bkd->bqk"}> : () -> ()
    %cst_18 = arith.constant dense<0.000000e+00> : vector<2x8x8xf32>
    %56 = tpu.matmul %51, %53, %cst_18 {dimension_numbers = #tpu.dot_dimension_numbers<[2], [2], [1], [1], [0, 0, 0, 1, 1, 1], [0], [0]>} : vector<2x8x64xbf16>, vector<2x8x64xbf16>, vector<2x8x8xf32> -> vector<2x8x8xf32>
    "tpu.trace_stop"() : () -> ()
    %cst_19 = arith.constant dense<0xFF800000> : vector<2x8xf32>
    %57 = vector.multi_reduction <maximumf>, %56, %cst_19 [2] : vector<2x8x8xf32> to vector<2x8xf32>
    %58 = vector.shape_cast %57 : vector<2x8xf32> to vector<2x8x1xf32>
    %59 = vector.broadcast %58 : vector<2x8x1xf32> to vector<2x8x8xf32>
    %60 = arith.subf %56, %59 : vector<2x8x8xf32>
    %61 = math.exp %60 : vector<2x8x8xf32>
    %cst_20 = arith.constant dense<0.000000e+00> : vector<2x8xf32>
    %62 = vector.multi_reduction <add>, %61, %cst_20 [2] : vector<2x8x8xf32> to vector<2x8xf32>
    %63 = vector.shape_cast %62 : vector<2x8xf32> to vector<2x8x1xf32>
    %64 = tpu.reciprocal %63 {approx = true} : vector<2x8x1xf32> -> vector<2x8x1xf32>
    %65 = vector.broadcast %64 : vector<2x8x1xf32> to vector<2x8x8xf32>
    %66 = arith.mulf %61, %65 : vector<2x8x8xf32>
    %67 = arith.truncf %66 : vector<2x8x8xf32> to vector<2x8x8xbf16>
    "tpu.trace_start"() <{level = 10 : i32, message = "bqk,bkd->bqd"}> : () -> ()
    %cst_21 = arith.constant dense<0.000000e+00> : vector<2x8x64xf32>
    %68 = tpu.matmul %67, %55, %cst_21 {dimension_numbers = #tpu.dot_dimension_numbers<[2], [1], [1], [2], [0, 0, 0, 1, 1, 2], [0], [0]>} : vector<2x8x8xbf16>, vector<2x8x64xbf16>, vector<2x8x64xf32> -> vector<2x8x64xf32>
    "tpu.trace_stop"() : () -> ()
    %69 = vector.shape_cast %68 : vector<2x8x64xf32> to vector<16x64xf32>
    %70 = arith.truncf %69 : vector<16x64xf32> to vector<16x64xbf16>
    %c3 = arith.constant 3 : index
    %c0_22 = arith.constant 0 : index
    %c0_23 = arith.constant 0 : index
    %71 = vector.load %arg2[%c3, %c0_22, %c0_23] : memref<4x64x64xbf16, #tpu.memory_space<vmem>>, vector<1x64x64xbf16>
    %72 = vector.shape_cast %71 : vector<1x64x64xbf16> to vector<64x64xbf16>
    %cst_24 = arith.constant dense<0.000000e+00> : vector<16x64xf32>
    %73 = tpu.matmul %70, %72, %cst_24 {dimension_numbers = #tpu.dot_dimension_numbers<[1], [0], [0], [1], [0, 0, 1, 1], [], []>} : vector<16x64xbf16>, vector<64x64xbf16>, vector<16x64xf32> -> vector<16x64xf32>
    %74 = vector.shape_cast %10 : vector<64xf32> to vector<1x64xf32>
    %75 = vector.broadcast %74 : vector<1x64xf32> to vector<16x64xf32>
    %76 = arith.addf %73, %75 : vector<16x64xf32>
    %77 = arith.addf %30, %76 : vector<16x64xf32>
    %cst_25 = arith.constant dense<0.000000e+00> : vector<16xf32>
    %78 = vector.multi_reduction <add>, %77, %cst_25 [1] : vector<16x64xf32> to vector<16xf32>
    %79 = vector.shape_cast %78 : vector<16xf32> to vector<16x1xf32>
    %cst_26 = arith.constant 6.400000e+01 : f32
    %80 = vector.broadcast %cst_26 : f32 to vector<16x1xf32>
    %81 = arith.divf %79, %80 : vector<16x1xf32>
    %82 = vector.broadcast %81 : vector<16x1xf32> to vector<16x64xf32>
    %83 = arith.subf %77, %82 : vector<16x64xf32>
    %84 = arith.mulf %83, %83 : vector<16x64xf32>
    %cst_27 = arith.constant dense<0.000000e+00> : vector<16xf32>
    %85 = vector.multi_reduction <add>, %84, %cst_27 [1] : vector<16x64xf32> to vector<16xf32>
    %86 = vector.shape_cast %85 : vector<16xf32> to vector<16x1xf32>
    %cst_28 = arith.constant 6.400000e+01 : f32
    %87 = vector.broadcast %cst_28 : f32 to vector<16x1xf32>
    %88 = arith.divf %86, %87 : vector<16x1xf32>
    %89 = vector.broadcast %81 : vector<16x1xf32> to vector<16x64xf32>
    %90 = arith.subf %77, %89 : vector<16x64xf32>
    %cst_29 = arith.constant 9.99999974E-6 : f32
    %91 = vector.broadcast %cst_29 : f32 to vector<16x1xf32>
    %92 = arith.addf %88, %91 : vector<16x1xf32>
    %93 = math.rsqrt %92 : vector<16x1xf32>
    %94 = vector.broadcast %93 : vector<16x1xf32> to vector<16x64xf32>
    %95 = arith.mulf %90, %94 : vector<16x64xf32>
    %96 = vector.shape_cast %12 : vector<64xf32> to vector<1x64xf32>
    %97 = vector.broadcast %96 : vector<1x64xf32> to vector<16x64xf32>
    %98 = arith.mulf %95, %97 : vector<16x64xf32>
    %99 = vector.shape_cast %14 : vector<64xf32> to vector<1x64xf32>
    %100 = vector.broadcast %99 : vector<1x64xf32> to vector<16x64xf32>
    %101 = arith.addf %98, %100 : vector<16x64xf32>
    %102 = arith.truncf %101 : vector<16x64xf32> to vector<16x64xbf16>
    %c0_30 = arith.constant 0 : index
    %c0_31 = arith.constant 0 : index
    %103 = vector.load %arg3[%c0_30, %c0_31] : memref<64x128xbf16, #tpu.memory_space<vmem>>, vector<64x128xbf16>
    %cst_32 = arith.constant dense<0.000000e+00> : vector<16x128xf32>
    %104 = tpu.matmul %102, %103, %cst_32 {dimension_numbers = #tpu.dot_dimension_numbers<[1], [0], [0], [1], [0, 0, 1, 1], [], []>} : vector<16x64xbf16>, vector<64x128xbf16>, vector<16x128xf32> -> vector<16x128xf32>
    %105 = vector.broadcast %21 : vector<1x128xf32> to vector<16x128xf32>
    %106 = arith.addf %104, %105 : vector<16x128xf32>
    %cst_33 = arith.constant 0.000000e+00 : f32
    %107 = vector.broadcast %cst_33 : f32 to vector<16x128xf32>
    %108 = arith.maximumf %106, %107 : vector<16x128xf32>
    %109 = arith.truncf %108 : vector<16x128xf32> to vector<16x128xbf16>
    %c0_34 = arith.constant 0 : index
    %c0_35 = arith.constant 0 : index
    %110 = vector.load %arg4[%c0_34, %c0_35] : memref<128x64xbf16, #tpu.memory_space<vmem>>, vector<128x64xbf16>
    %cst_36 = arith.constant dense<0.000000e+00> : vector<16x64xf32>
    %111 = tpu.matmul %109, %110, %cst_36 {dimension_numbers = #tpu.dot_dimension_numbers<[1], [0], [0], [1], [0, 0, 1, 1], [], []>} : vector<16x128xbf16>, vector<128x64xbf16>, vector<16x64xf32> -> vector<16x64xf32>
    %112 = vector.shape_cast %16 : vector<64xf32> to vector<1x64xf32>
    %113 = vector.broadcast %112 : vector<1x64xf32> to vector<16x64xf32>
    %114 = arith.addf %111, %113 : vector<16x64xf32>
    %115 = arith.addf %101, %114 : vector<16x64xf32>
    %cst_37 = arith.constant dense<0.000000e+00> : vector<16xf32>
    %116 = vector.multi_reduction <add>, %115, %cst_37 [1] : vector<16x64xf32> to vector<16xf32>
    %117 = vector.shape_cast %116 : vector<16xf32> to vector<16x1xf32>
    %cst_38 = arith.constant 6.400000e+01 : f32
    %118 = vector.broadcast %cst_38 : f32 to vector<16x1xf32>
    %119 = arith.divf %117, %118 : vector<16x1xf32>
    %120 = vector.broadcast %119 : vector<16x1xf32> to vector<16x64xf32>
    %121 = arith.subf %115, %120 : vector<16x64xf32>
    %122 = arith.mulf %121, %121 : vector<16x64xf32>
    %cst_39 = arith.constant dense<0.000000e+00> : vector<16xf32>
    %123 = vector.multi_reduction <add>, %122, %cst_39 [1] : vector<16x64xf32> to vector<16xf32>
    %124 = vector.shape_cast %123 : vector<16xf32> to vector<16x1xf32>
    %cst_40 = arith.constant 6.400000e+01 : f32
    %125 = vector.broadcast %cst_40 : f32 to vector<16x1xf32>
    %126 = arith.divf %124, %125 : vector<16x1xf32>
    %127 = vector.broadcast %119 : vector<16x1xf32> to vector<16x64xf32>
    %128 = arith.subf %115, %127 : vector<16x64xf32>
    %cst_41 = arith.constant 9.99999974E-6 : f32
    %129 = vector.broadcast %cst_41 : f32 to vector<16x1xf32>
    %130 = arith.addf %126, %129 : vector<16x1xf32>
    %131 = math.rsqrt %130 : vector<16x1xf32>
    %132 = vector.broadcast %131 : vector<16x1xf32> to vector<16x64xf32>
    %133 = arith.mulf %128, %132 : vector<16x64xf32>
    %134 = vector.shape_cast %18 : vector<64xf32> to vector<1x64xf32>
    %135 = vector.broadcast %134 : vector<1x64xf32> to vector<16x64xf32>
    %136 = arith.mulf %133, %135 : vector<16x64xf32>
    %137 = vector.shape_cast %20 : vector<64xf32> to vector<1x64xf32>
    %138 = vector.broadcast %137 : vector<1x64xf32> to vector<16x64xf32>
    %139 = arith.addf %136, %138 : vector<16x64xf32>
    %cst_42 = arith.constant 0.000000e+00 : f32
    %140 = vector.broadcast %cst_42 : f32 to vector<16x64xf32>
    %141 = arith.maximumf %139, %140 : vector<16x64xf32>
    %c0_43 = arith.constant 0 : index
    %c0_44 = arith.constant 0 : index
    %142 = vector.load %arg7[%c0_43, %c0_44] : memref<16x64xf32, #tpu.memory_space<vmem>>, vector<16x64xf32>
    tpu.vector_store %arg7[%c0_43, %c0_44], %141 {strides = array<i32>} : memref<16x64xf32, #tpu.memory_space<vmem>>, vector<16x64xf32>,
    return
  }
}

</mosaic_0001>

<bundles_post_ra>
// kernel: tpu_custom_call.1
= control target key start
LH: loop header
LB: loop body
LE: loop exit
PB: predicated region body
PF: predicated region fallthrough
CT: control target
= control target key end

     0   :  { %12 = vsyncpa [#allocation3], 0  ;;  %s1480_s0 = inlined_call_operand.vmem [shape: f32[16,4], index: 0, kind: input, shape index: {}]   ;;  %s1481_s1 = inlined_call_operand.vmem [shape: bf16[4,64], index: 1, kind: input, shape index: {}]   ;;  %s1482_s2 = inlined_call_operand.hbm [shape: bf16[4,64,64], index: 2, kind: input, shape index: {}]   ;;  %s1483_s3 = inlined_call_operand.vmem [shape: bf16[64,128], index: 3, kind: input, shape index: {}]   ;;  %s1484_s4 = inlined_call_operand.vmem [shape: bf16[128,64], index: 4, kind: input, shape index: {}]   ;;  %s1485_s5 = inlined_call_operand.vmem [shape: f32[10,64], index: 5, kind: input, shape index: {}]   ;;  %s1486_s6 = inlined_call_operand.vmem [shape: f32[1,128], index: 6, kind: input, shape index: {}]   ;;  %s1487_s7 = inlined_call_operand.hbm [shape: f32[16,64], index: 7, kind: output, shape index: {}]  }
   0x1   :  { %13 = vsyncpa [#allocation4], 0  ;;  %s1230_s24 = smov [#allocation2]   ;;  %s1182_s28 = scalar_lea.hbm %s1482_s2, 2048 }
   0x2   :  { %s23_s25 = sshll.u32 %s1230_s24, 4  ;;  %p1183_p0 = scmp.ne.s32.totalorder %s1482_s2, %s1182_s28  ;;  %s24_s25 = int_to_ptr.vmem [resolvable:$true] %s23_s25 }
   0x3   :  { %p1186_p1 = scmp.lt.u32.totalorder %s1182_s28, %s1482_s2 }
   0x5   :  { %p1188_p2 = pnand %p1186_p1, %p1183_p0 }
   0x7   :  { %1191 = shalt.err (!%p1188_p2)
}
   0x8   :  { %s1192_s10 = scalar_lea.vmem %s24_s25, 2048  ;;  %p1197_p4 = scmp.lt.s32.totalorder %s24_s25, %s24_s25 }
   0x9   :  { %p1193_p3 = scmp.ne.s32.totalorder %s24_s25, %s1192_s10  ;;  %p1198_p5 = scmp.lt.s32.totalorder %s1192_s10, %s1192_s10 }
   0xb   :  { %p1199_p6 = por %p1198_p5, %p1197_p4 }
   0xd   :  { %p1200_p7 = pnand %p1199_p6, %p1193_p3 }
   0xf   :  { %1203 = shalt.err (!%p1200_p7)
}
  0x10   :  { %s1231_s11 = smov 64   ;;  %s1232_s12 = smov 4  }
  0x11   :  { %29 = dma.hbm_to_vmem [thread:$0]  %s1482_s2, 2048, %s24_s25, [#allocation3], %s1231_s11, %s1231_s11, %s1232_s12  }
  0x12   :  { %1226 = dma.done.wait [#allocation3], 2048  }
  0x13   :  { %1227 = vsyncadd [#allocation3], 4294965248  ;;  %v1233_v0 = vmov 0.0   ;;  %vm1234_vm0 = vmmov 0   ;;  %vm57_vm1 = vcmask 1041408   ;;  %v45_v2 = vld [vmem:[%s1480_s0] sm:$0xff]  ;;  %v49_v14 = vlaneseq }
  0x14   :  { %1020 = vmatprep.subr.bf16.mxu0 %v1233_v0  ;;  %1022 = vmatprep.mubr.msk.bf16.mxu0 %vm1234_vm0, %v1233_v0  ;;  %v48_v1 = vld [vmem:[%s1481_s1] sm:$0x3]  ;;  %v46_v3 = vld [vmem:[%s1480_s0 + $0x8] sm:$0xff]  ;;  %v1138_v6 = vld [vmem:[#allocation2] sm:$0xff]   ;;  %vm53_vm2 = vcmask 31744   ;;  %vm141_vm3 = vcmask 523264  }
  0x15   :  { %1050 = vmatprep.subr.bf16.mxu1 %v1233_v0  ;;  %1058 = vmatprep.mubr.msk.bf16.mxu1 %vm1234_vm0, %v1233_v0  ;;  %v59_v4 = vsel %vm57_vm1, %v48_v1, 0  ;;  %v47_v5 = vpack.c.bf16 %v46_v3, %v45_v2  ;;  %v1139_v7 = vld [vmem:[#allocation2 + $0x40] sm:$0xff]   ;;  %v1141_v8 = vld [vmem:[#allocation2 + $0x48] sm:$0xff]   ;;  %v1142_v10 = vld [vmem:[#allocation2 + $0x10] sm:$0xff]   ;;  %v1316_v15 = vshrl.u32 %v49_v14, 7  ;;  %vm468_vm4 = vcmask 1043456  }
  0x16   :  { %1021 = vmatpush3.bf16.msra.mxu0 %v59_v4  ;;  %1051 = vmatpush3.bf16.msra.mxu1 %v1139_v7  ;;  %v1140_v9 = vld [vmem:[#allocation2 + $0x8] sm:$0xff]   ;;  %v1143_v11 = vld [vmem:[#allocation2 + $0x50] sm:$0xff]   ;;  %v1144_v12 = vld [vmem:[#allocation2 + $0x18] sm:$0xff]   ;;  %vm440_vm5 = vcmask 64512   ;;  %s1235_s1 = smov [#allocation5]  }
  0x17   :  { %1026 = vmatprep.subr.bf16.mxu0 %v1233_v0  ;;  %1052 = vmatprep.subr.bf16.mxu1 %v1233_v0  ;;  %v1145_v13 = vld [vmem:[#allocation2 + $0x58] sm:$0xff]   ;;  %v51_v16 = vsub.s32 0, %v1316_v15  ;;  %v1322_v17 = vld [vmem:[%s1485_s5] sm:$0xff]  ;;  %v1146_v27 = vld [vmem:[#allocation2 + $0x20] sm:$0xff]   ;;  %v275_v32 = vsub.s32 3, %v1316_v15  ;;  %v197_v45 = vsub.s32 2, %v1316_v15 }
  0x18   :  { %v1147_v29 = vld [vmem:[#allocation2 + $0x28] sm:$0xff]   ;;  %v1148_v30 = vld [vmem:[#allocation2 + $0x30] sm:$0xff]   ;;  %v1149_v31 = vld [vmem:[#allocation2 + $0x38] sm:$0xff]   ;;  %v115_v47 = vsub.s32 1, %v1316_v15  ;;  %s925_s20 = sshll.u32 %s1235_s1, 4  ;;  %s926_s20 = int_to_ptr.vmem [resolvable:$true] %s925_s20 }
  0x19   :  { %1023 = vmatmul.mubr.msk.bf16.vlgmr.msra.gmra.mrb[0].mxu0 %vm53_vm2, %v47_v5  ;;  %v52_v18 = vrot.slane %v1322_v17, %v51_v16  ;;  %v276_v33 = vrot.slane %v1322_v17, %v275_v32  ;;  %v198_v46 = vrot.slane %v1322_v17, %v197_v45  ;;  %p1209_p9 = scmp.lt.s32.totalorder %s926_s20, %s926_s20 }
  0x1a   :  { %1027 = vmatpush3.bf16.msra.mxu0 %v1138_v6  ;;  %1034 = vmatprep.mubr.msk.bf16.mxu0 %vm1234_vm0, %v1233_v0  ;;  %v116_v52 = vrot.slane %v1322_v17, %v115_v47 }
  0x1b   :  { %1028 = vmatprep.subr.bf16.mxu0 %v1233_v0  ;;  %1053 = vmatpush3.bf16.msra.mxu1 %v1141_v8 }
  0x1c   :  { %1054 = vmatprep.subr.bf16.mxu1 %v1233_v0 }
  0x1e   :  { %1029 = vmatpush3.bf16.msra.mxu0 %v1140_v9 }
  0x1f   :  { %1030 = vmatprep.subr.bf16.mxu0 %v1233_v0  ;;  %1055 = vmatpush3.bf16.msra.mxu1 %v1143_v11 }
  0x20   :  { %1056 = vmatprep.subr.bf16.mxu1 %v1233_v0 }
  0x22   :  { %1031 = vmatpush3.bf16.msra.mxu0 %v1142_v10 }
  0x23   :  { %1032 = vmatprep.subr.bf16.mxu0 %v1233_v0  ;;  %1057 = vmatpush3.bf16.msra.mxu1 %v1145_v13 }
  0x24   :  { %1074 = vmatprep.subr.bf16.mxu1 %v1233_v0 }
  0x26   :  { %1033 = vmatpush3.bf16.msra.mxu0 %v1144_v12 }
  0x27   :  { %1038 = vmatprep.subr.bf16.mxu0 %v1233_v0 }
  0xec   :  { %v95_v19 = vpop.f32.mrb[0].mxu0 }
  0xed   :  { %v1327_v20 = vadd.f32 %v95_v19, %v52_v18  ;;  %v1024_v21 = vpop.f32.mrb[1].mxu0 }
  0xee   :  { %v98_v22 = vpop.f32.mrb[2].mxu0 }
  0xef   :  { %v1329_v23 = vadd.f32 %v98_v22, %v52_v18  ;;  %v1025_v24 = vpop.f32.mrb[3].mxu0  ;;  %v102_v25 = vmax.f32 %v1327_v20, 0.0 }
  0xf1   :  { %v103_v26 = vmax.f32 %v1329_v23, 0.0  ;;  %v1154_v23 = vld [vmem:[%s1483_s3] sm:$0xff]  }
  0xf3   :  { %v104_v28 = vpack.c.bf16 %v103_v26, %v102_v25 }
  0xf5   :  { %1035 = vmatmul.mubr.msk.bf16.vlgmr.msra.gmra.mrb[4].mxu0 %vm141_vm3, %v104_v28  ;;  %1059 = vmatmul.mubr.msk.bf16.vlgmr.msra.gmra.mrb[0].mxu1 %vm141_vm3, %v104_v28 }
  0xf6   :  { %1039 = vmatpush3.bf16.msra.mxu0 %v1146_v27  ;;  %1046 = vmatprep.mubr.msk.bf16.mxu0 %vm1234_vm0, %v1233_v0 }
  0xf7   :  { %1040 = vmatprep.subr.bf16.mxu0 %v1233_v0  ;;  %1076 = vmatprep.mubr.msk.bf16.mxu1 %vm1234_vm0, %v1233_v0 }
  0xfa   :  { %1041 = vmatpush3.bf16.msra.mxu0 %v1147_v29 }
  0xfb   :  { %1042 = vmatprep.subr.bf16.mxu0 %v1233_v0 }
  0xfe   :  { %1043 = vmatpush3.bf16.msra.mxu0 %v1148_v30 }
  0xff   :  { %1044 = vmatprep.subr.bf16.mxu0 %v1233_v0 }
 0x102   :  { %1045 = vmatpush3.bf16.msra.mxu0 %v1149_v31 }
 0x103   :  { %1062 = vmatprep.subr.bf16.mxu0 %v1233_v0 }
 0x105   :  { %1047 = vmatmul.mubr.msk.bf16.vlgmr.msra.gmra.mrb[8].mxu0 %vm141_vm3, %v104_v28 }
 0x106   :  { %1064 = vmatprep.mubr.msk.bf16.mxu0 %vm1234_vm0, %v1233_v0 }
 0x1c8   :  { %v179_v34 = vpop.f32.mrb[4].mxu0  ;;  %v335_v35 = vpop.f32.mrb[0].mxu1 }
 0x1c9   :  { %v336_v36 = vadd.f32 %v335_v35, %v276_v33  ;;  %v1036_v37 = vpop.f32.mrb[5].mxu0  ;;  %v1060_v38 = vpop.f32.mrb[1].mxu1  ;;  %v180_v57 = vadd.f32 %v179_v34, %v116_v52  ;;  %v1150_v34 = vld [vmem:[#allocation2 + $0x60] sm:$0xff]  }
 0x1ca   :  { %v182_v39 = vpop.f32.mrb[6].mxu0  ;;  %v338_v40 = vpop.f32.mrb[2].mxu1 }
 0x1cb   :  { %v346_v41 = vpack.c.bf16 %v336_v36, %v336_v36  ;;  %v1037_v42 = vpop.f32.mrb[7].mxu0  ;;  %v1061_v43 = vpop.f32.mrb[3].mxu1  ;;  %v342_v59 = vpack.c.bf16 %v180_v57, %v180_v57  ;;  %v339_v60 = vadd.f32 %v338_v40, %v276_v33  ;;  %v183_v62 = vadd.f32 %v182_v39, %v116_v52  ;;  %v1151_v39 = vld [vmem:[#allocation2 + $0x68] sm:$0xff]   ;;  %v1152_v40 = vld [vmem:[#allocation2 + $0x70] sm:$0xff]  }
 0x1cc   :  { %v570_v52 = vsub.s32 4, %v1316_v15 }
 0x1cd   :  { %v470_v44 = vsel %vm468_vm4, %v346_v41, 0  ;;  %v347_v63 = vpack.c.bf16 %v339_v60, %v339_v60  ;;  %v343_v1 = vpack.c.bf16 %v183_v62, %v183_v62  ;;  %v1153_v41 = vld [vmem:[#allocation2 + $0x78] sm:$0xff]  }
 0x1ce   :  { %1075 = vmatpush3.bf16.msra.mxu1 %v470_v44 }
 0x1cf   :  { %1086 = vmatprep.subr.bf16.mxu1 %v1233_v0  ;;  %v516_v2 = vsel %vm468_vm4, %v347_v63, 0 }
 0x1d8   :  { %v257_v48 = vpop.f32.mrb[8].mxu0 }
 0x1d9   :  { %v258_v49 = vadd.f32 %v257_v48, %v198_v46  ;;  %v1048_v50 = vpop.f32.mrb[9].mxu0 }
 0x1da   :  { %v260_v51 = vpop.f32.mrb[10].mxu0 }
 0x1db   :  { %v344_v53 = vpack.c.bf16 %v258_v49, %v258_v49  ;;  %v1049_v54 = vpop.f32.mrb[11].mxu0  ;;  %v261_v56 = vadd.f32 %v260_v51, %v198_v46 }
 0x1dd   :  { %v352_v55 = vsel %vm141_vm3, %v344_v53, 0  ;;  %v345_v58 = vpack.c.bf16 %v261_v56, %v261_v56  ;;  %v571_v53 = vrot.slane %v1322_v17, %v570_v52 }
 0x1de   :  { %1063 = vmatpush3.bf16.xpose.msra.mxu0 %v352_v55 }
 0x1df   :  { %1068 = vmatprep.subr.bf16.mxu0 %v1233_v0  ;;  %v398_v61 = vsel %vm141_vm3, %v345_v58, 0 }
 0x1e5   :  { %1065 = vmatmul.mubr.msk.bf16.vlgmr.msra.gmra.mrb[12].mxu0 %vm141_vm3, %v342_v59 }
 0x1e6   :  { %1069 = vmatpush3.bf16.xpose.msra.mxu0 %v398_v61  ;;  %1070 = vmatprep.mubr.msk.bf16.mxu0 %vm1234_vm0, %v1233_v0 }
 0x1e7   :  { %1080 = vmatprep.subr.bf16.mxu0 %v1233_v0 }
 0x1ed   :  { %1071 = vmatmul.mubr.msk.bf16.vlgmr.msra.gmra.mrb[16].mxu0 %vm141_vm3, %v343_v1 }
 0x1ee   :  { %1081 = vmatpush3.bf16.msra.mxu0 %v516_v2  ;;  %1082 = vmatprep.mubr.msk.bf16.mxu0 %vm1234_vm0, %v1233_v0 }
 0x1ef   :  { %1098 = vmatprep.subr.bf16.mxu0 %v1233_v0 }
 0x2b8   :  { %v388_v3 = vpop.f32.mrb[12].mxu0 }
 0x2b9   :  { %v1066_v4 = vpop.f32.mrb[13].mxu0  ;;  %v441_v5 = vsel %vm440_vm5, %v388_v3, -inf }
 0x2ba   :  { %442 = vmax.xlane.f32.xlu0 %v441_v5  ;;  %v391_v6 = vpop.f32.mrb[14].mxu0 }
 0x2bb   :  { %v1067_v7 = vpop.f32.mrb[15].mxu0 }
 0x2c0   :  { %v434_v8 = vpop.f32.mrb[16].mxu0 }
 0x2c1   :  { %v1072_v9 = vpop.f32.mrb[17].mxu0  ;;  %v444_v10 = vsel %vm440_vm5, %v434_v8, -inf }
 0x2c2   :  { %445 = vmax.xlane.f32.xlu0 %v444_v10  ;;  %v437_v11 = vpop.f32.mrb[18].mxu0  ;;  %v1156_v9 = vld [vmem:[%s1483_s3 + $0x10] sm:$0xff]   ;;  %v1157_v10 = vld [vmem:[%s1483_s3 + $0x18] sm:$0xff]  }
 0x2c3   :  { %v1073_v12 = vpop.f32.mrb[19].mxu0  ;;  %v1158_v11 = vld [vmem:[%s1484_s4] sm:$0xff]  }
 0x2c4   :  { %v1159_v12 = vld [vmem:[%s1484_s4 + $0x8] sm:$0xff]  }
 0x347   :  { %v443_v13 = vpop.xlane.xlu0 %442 }
 0x348   :  { %v447_v14 = vsub.f32 %v388_v3, %v443_v13  ;;  %v1160_v13 = vld [vmem:[%s1484_s4 + $0x10] sm:$0xff]  }
 0x34a   :  { %v449_v18 = vmul.f32 1.442695, %v447_v14  ;;  %v1161_v14 = vld [vmem:[%s1484_s4 + $0x18] sm:$0xff]  }
 0x34c   :  { %1166 = vpow2.f32 %v449_v18  ;;  %v1162_v18 = vld [vmem:[%s1484_s4 + $0x20] sm:$0xff]  }
 0x34f   :  { %v446_v19 = vpop.xlane.xlu0 %445 }
 0x350   :  { %v448_v21 = vsub.f32 %v434_v8, %v446_v19  ;;  %v1163_v19 = vld [vmem:[%s1484_s4 + $0x28] sm:$0xff]  }
 0x352   :  { %v451_v22 = vmul.f32 1.442695, %v448_v21 }
 0x354   :  { %1168 = vpow2.f32 %v451_v22 }
 0x356   :  { %v1167_v24 = vpop.eup %1166 }
 0x357   :  { %v453_v27 = vsel %vm440_vm5, %v1167_v24, 0.0 }
 0x358   :  { %454 = vadd.xlane.f32.xlu1 %v453_v27 }
 0x35e   :  { %v1169_v28 = vpop.eup %1168 }
 0x35f   :  { %v456_v29 = vsel %vm440_vm5, %v1169_v28, 0.0 }
 0x360   :  { %457 = vadd.xlane.f32.xlu1 %v456_v29 }
 0x3e5   :  { %v455_v30 = vpop.xlane.xlu1 %454 }
 0x3e6   :  { %1170 = vrcp.f32 %v455_v30  ;;  %v671_v30 = vsub.s32 5, %v1316_v15 }
 0x3ed   :  { %v458_v31 = vpop.xlane.xlu1 %457 }
 0x3ee   :  { %1172 = vrcp.f32 %v458_v31  ;;  %v672_v31 = vrot.slane %v1322_v17, %v671_v30 }
 0x3f0   :  { %v1171_v32 = vpop.eup %1170 }
 0x3f1   :  { %v461_v33 = vmul.f32 %v1171_v32, %v1167_v24  ;;  %v677_v32 = vsub.s32 6, %v1316_v15 }
 0x3f3   :  { %v463_v35 = vpack.c.bf16 %v461_v33, %v461_v33 }
 0x3f5   :  { %1077 = vmatmul.mubr.msk.bf16.vlgmr.msra.gmra.mrb[4].mxu1 %vm440_vm5, %v463_v35 }
 0x3f6   :  { %1087 = vmatpush3.bf16.msra.mxu1 %v1150_v34  ;;  %1094 = vmatprep.mubr.msk.bf16.mxu1 %vm1234_vm0, %v1233_v0 }
 0x3f7   :  { %1088 = vmatprep.subr.bf16.mxu1 %v1233_v0 }
 0x3f8   :  { %v1173_v36 = vpop.eup %1172 }
 0x3f9   :  { %v462_v37 = vmul.f32 %v1173_v36, %v1169_v28 }
 0x3fa   :  { %1089 = vmatpush3.bf16.msra.mxu1 %v1151_v39 }
 0x3fb   :  { %v464_v38 = vpack.c.bf16 %v462_v37, %v462_v37  ;;  %1090 = vmatprep.subr.bf16.mxu1 %v1233_v0 }
 0x3fd   :  { %1083 = vmatmul.mubr.msk.bf16.vlgmr.msra.gmra.mrb[20].mxu0 %vm440_vm5, %v464_v38  ;;  %v678_v38 = vrot.slane %v1322_v17, %v677_v32 }
 0x3fe   :  { %1106 = vmatprep.mubr.msk.bf16.mxu0 %vm1234_vm0, %v1233_v0  ;;  %1091 = vmatpush3.bf16.msra.mxu1 %v1152_v40 }
 0x3ff   :  { %1092 = vmatprep.subr.bf16.mxu1 %v1233_v0  ;;  %1099 = vmatpush3.bf16.msra.mxu0 %v1154_v23 }
 0x400   :  { %1100 = vmatprep.subr.bf16.mxu0 %v1233_v0 }
 0x402   :  { %1093 = vmatpush3.bf16.msra.mxu1 %v1153_v41 }
 0x403   :  { %1110 = vmatprep.subr.bf16.mxu1 %v1233_v0 }
 0x4c8   :  { %v506_v42 = vpop.f32.mrb[4].mxu1 }
 0x4c9   :  { %v1078_v43 = vpop.f32.mrb[5].mxu1 }
 0x4ca   :  { %v509_v44 = vpop.f32.mrb[6].mxu1  ;;  %v1164_v43 = vld [vmem:[%s1484_s4 + $0x30] sm:$0xff]  }
 0x4cb   :  { %v1079_v45 = vpop.f32.mrb[7].mxu1  ;;  %v1165_v44 = vld [vmem:[%s1484_s4 + $0x38] sm:$0xff]  }
 0x4cc   :  { %v962_v45 = vld [vmem:[%s1486_s6] ss:$0 sm:$0xff] }
 0x4d0   :  { %v552_v46 = vpop.f32.mrb[20].mxu0 }
 0x4d1   :  { %v558_v48 = vpack.c.bf16 %v552_v46, %v506_v42  ;;  %v1084_v49 = vpop.f32.mrb[21].mxu0 }
 0x4d2   :  { %v555_v50 = vpop.f32.mrb[22].mxu0 }
 0x4d3   :  { %v1085_v51 = vpop.f32.mrb[23].mxu0  ;;  %1095 = vmatmul.mubr.msk.bf16.vlgmr.msra.gmra.mrb[8].mxu1 %vm141_vm3, %v558_v48 }
 0x4d4   :  { %1126 = vmatprep.mubr.msk.bf16.mxu1 %vm1234_vm0, %v1233_v0  ;;  %1111 = vmatpush3.bf16.msra.mxu1 %v1158_v11 }
 0x4d5   :  { %1112 = vmatprep.subr.bf16.mxu1 %v1233_v0 }
 0x4d8   :  { %1113 = vmatpush3.bf16.msra.mxu1 %v1159_v12 }
 0x4d9   :  { %1114 = vmatprep.subr.bf16.mxu1 %v1233_v0 }
 0x4dc   :  { %1115 = vmatpush3.bf16.msra.mxu1 %v1160_v13 }
 0x4dd   :  { %1116 = vmatprep.subr.bf16.mxu1 %v1233_v0 }
 0x4e0   :  { %1117 = vmatpush3.bf16.msra.mxu1 %v1161_v14 }
 0x4e1   :  { %1118 = vmatprep.subr.bf16.mxu1 %v1233_v0 }
 0x4e4   :  { %1119 = vmatpush3.bf16.msra.mxu1 %v1162_v18  ;;  %v43_v18 = vld [vmem:[%s1485_s5 + $0x8] sm:$0x3]  ;;  %s1204_s5 = scalar_lea.vmem %s926_s20, 256 }
 0x4e5   :  { %1120 = vmatprep.subr.bf16.mxu1 %v1233_v0  ;;  %p1205_p8 = scmp.ne.s32.totalorder %s926_s20, %s1204_s5  ;;  %p1210_p10 = scmp.lt.s32.totalorder %s1204_s5, %s1204_s5 }
 0x4e7   :  { %p1211_p11 = por %p1210_p10, %p1209_p9 }
 0x4e8   :  { %1121 = vmatpush3.bf16.msra.mxu1 %v1163_v19  ;;  %v907_v19 = vrot.slane %v43_v18, %v51_v16 }
 0x4e9   :  { %1122 = vmatprep.subr.bf16.mxu1 %v1233_v0  ;;  %p1212_p12 = pnand %p1211_p11, %p1205_p8 }
 0x4ec   :  { %1123 = vmatpush3.bf16.msra.mxu1 %v1164_v43 }
 0x4ed   :  { %1124 = vmatprep.subr.bf16.mxu1 %v1233_v0 }
 0x4f0   :  { %1125 = vmatpush3.bf16.msra.mxu1 %v1165_v44 }
 0x5a6   :  { %v633_v54 = vpop.f32.mrb[8].mxu1 }
 0x5a7   :  { %v634_v55 = vadd.f32 %v633_v54, %v571_v53  ;;  %v1096_v56 = vpop.f32.mrb[9].mxu1 }
 0x5a8   :  { %v636_v57 = vpop.f32.mrb[10].mxu1 }
 0x5a9   :  { %v637_v58 = vadd.f32 %v636_v57, %v571_v53  ;;  %v1097_v59 = vpop.f32.mrb[11].mxu1  ;;  %v640_v60 = vadd.f32 %v634_v55, %v102_v25 }
 0x5ab   :  { %v642_v61 = vsel %vm141_vm3, %v640_v60, 0.0  ;;  %v641_v62 = vadd.f32 %v637_v58, %v103_v26  ;;  %v1155_v26 = vld [vmem:[%s1483_s3 + $0x8] sm:$0xff]  }
 0x5ac   :  { %643 = vadd.xlane.f32.xlu0 %v642_v61  ;;  %1101 = vmatpush3.bf16.msra.mxu0 %v1155_v26 }
 0x5ad   :  { %v645_v63 = vsel %vm141_vm3, %v641_v62, 0.0  ;;  %1102 = vmatprep.subr.bf16.mxu0 %v1233_v0 }
 0x5ae   :  { %646 = vadd.xlane.f32.xlu1 %v645_v63 }
 0x5b0   :  { %1103 = vmatpush3.bf16.msra.mxu0 %v1156_v9 }
 0x5b1   :  { %1104 = vmatprep.subr.bf16.mxu0 %v1233_v0  ;;  %v785_v0 = vsub.s32 7, %v1316_v15 }
 0x5b3   :  { %v786_v56 = vrot.slane %v1322_v17, %v785_v0 }
 0x5b4   :  { %1105 = vmatpush3.bf16.msra.mxu0 %v1157_v10 }
 0x639   :  { %v644_v1 = vpop.xlane.xlu0 %643 }
 0x63a   :  { %v649_v2 = vmul.f32 0.015625, %v644_v1 }
 0x63b   :  { %v647_v3 = vpop.xlane.xlu1 %646 }
 0x63c   :  { %v651_v4 = vsub.f32 %v640_v60, %v649_v2  ;;  %v650_v5 = vmul.f32 0.015625, %v647_v3 }
 0x63e   :  { %v652_v6 = vsub.f32 %v641_v62, %v650_v5  ;;  %v653_v7 = vmul.f32 %v651_v4, %v651_v4 }
 0x640   :  { %v655_v8 = vsel %vm141_vm3, %v653_v7, 0.0  ;;  %v654_v20 = vmul.f32 %v652_v6, %v652_v6 }
 0x641   :  { %656 = vadd.xlane.f32.xlu0 %v655_v8 }
 0x642   :  { %v658_v25 = vsel %vm141_vm3, %v654_v20, 0.0 }
 0x643   :  { %659 = vadd.xlane.f32.xlu1 %v658_v25 }
 0x6ce   :  { %v657_v21 = vpop.xlane.xlu0 %656 }
 0x6cf   :  { %v661_v22 = vmul.f32 0.015625, %v657_v21 }
 0x6d0   :  { %v660_v24 = vpop.xlane.xlu1 %659 }
 0x6d1   :  { %v663_v27 = vadd.f32 1e-05, %v661_v22  ;;  %v662_v28 = vmul.f32 0.015625, %v660_v24  ;;  %v913_v22 = vrot.slane %v43_v18, %v115_v47 }
 0x6d3   :  { %1174 = vrsqrt.f32 %v663_v27  ;;  %v664_v29 = vadd.f32 1e-05, %v662_v28 }
 0x6d5   :  { %1176 = vrsqrt.f32 %v664_v29 }
 0x6dd   :  { %v1175_v33 = vpop.eup %1174 }
 0x6de   :  { %v667_v34 = vmul.f32 %v1175_v33, %v651_v4 }
 0x6df   :  { %v1177_v35 = vpop.eup %1176 }
 0x6e0   :  { %v673_v36 = vmul.f32 %v672_v31, %v667_v34  ;;  %v668_v37 = vmul.f32 %v1177_v35, %v652_v6 }
 0x6e2   :  { %v674_v39 = vmul.f32 %v672_v31, %v668_v37  ;;  %v679_v40 = vadd.f32 %v678_v38, %v673_v36 }
 0x6e4   :  { %v680_v41 = vadd.f32 %v678_v38, %v674_v39 }
 0x6e6   :  { %v681_v42 = vpack.c.bf16 %v680_v41, %v679_v40 }
 0x6e8   :  { %1107 = vmatmul.mubr.msk.bf16.vlgmr.msra.gmra.mrb[24].mxu0 %vm141_vm3, %v681_v42 }
 0x7bb   :  { %v757_v46 = vpop.f32.mrb[24].mxu0 }
 0x7bc   :  { %v758_v48 = vadd.f32 %v962_v45, %v757_v46  ;;  %v1108_v49 = vpop.f32.mrb[25].mxu0 }
 0x7bd   :  { %v760_v50 = vpop.f32.mrb[26].mxu0 }
 0x7be   :  { %v761_v51 = vadd.f32 %v962_v45, %v760_v50  ;;  %v1109_v52 = vpop.f32.mrb[27].mxu0  ;;  %v764_v53 = vmax.f32 %v758_v48, 0.0 }
 0x7c0   :  { %v765_v54 = vmax.f32 %v761_v51, 0.0 }
 0x7c2   :  { %v766_v55 = vpack.c.bf16 %v765_v54, %v764_v53 }
 0x7c4   :  { %1127 = vmatmul.mubr.bf16.vlgmr.msra.gmra.mrb[12].mxu1 %v766_v55 }
 0x897   :  { %v869_v57 = vpop.f32.mrb[12].mxu1 }
 0x898   :  { %v870_v58 = vadd.f32 %v869_v57, %v786_v56  ;;  %v1128_v59 = vpop.f32.mrb[13].mxu1 }
 0x899   :  { %v872_v60 = vpop.f32.mrb[14].mxu1 }
 0x89a   :  { %v873_v61 = vadd.f32 %v872_v60, %v786_v56  ;;  %v1129_v62 = vpop.f32.mrb[15].mxu1  ;;  %v876_v63 = vadd.f32 %v870_v58, %v679_v40 }
 0x89c   :  { %v878_v1 = vsel %vm141_vm3, %v876_v63, 0.0  ;;  %v877_v2 = vadd.f32 %v873_v61, %v680_v41 }
 0x89d   :  { %879 = vadd.xlane.f32.xlu0 %v878_v1 }
 0x89e   :  { %v881_v3 = vsel %vm141_vm3, %v877_v2, 0.0 }
 0x89f   :  { %882 = vadd.xlane.f32.xlu1 %v881_v3 }
 0x92a   :  { %v880_v4 = vpop.xlane.xlu0 %879 }
 0x92b   :  { %v884_v5 = vmul.f32 0.015625, %v880_v4 }
 0x92c   :  { %v883_v6 = vpop.xlane.xlu1 %882 }
 0x92d   :  { %v886_v7 = vsub.f32 %v876_v63, %v884_v5  ;;  %v885_v8 = vmul.f32 0.015625, %v883_v6 }
 0x92f   :  { %v887_v17 = vsub.f32 %v877_v2, %v885_v8  ;;  %v888_v20 = vmul.f32 %v886_v7, %v886_v7 }
 0x931   :  { %v890_v25 = vsel %vm141_vm3, %v888_v20, 0.0  ;;  %v889_v23 = vmul.f32 %v887_v17, %v887_v17 }
 0x932   :  { %891 = vadd.xlane.f32.xlu0 %v890_v25 }
 0x933   :  { %v893_v26 = vsel %vm141_vm3, %v889_v23, 0.0 }
 0x934   :  { %894 = vadd.xlane.f32.xlu1 %v893_v26 }
 0x9bf   :  { %v892_v9 = vpop.xlane.xlu0 %891 }
 0x9c0   :  { %v896_v10 = vmul.f32 0.015625, %v892_v9 }
 0x9c1   :  { %v895_v11 = vpop.xlane.xlu1 %894 }
 0x9c2   :  { %v898_v12 = vadd.f32 1e-05, %v896_v10  ;;  %v897_v13 = vmul.f32 0.015625, %v895_v11 }
 0x9c4   :  { %1178 = vrsqrt.f32 %v898_v12  ;;  %v899_v14 = vadd.f32 1e-05, %v897_v13 }
 0x9c6   :  { %1180 = vrsqrt.f32 %v899_v14 }
 0x9ce   :  { %v1179_v21 = vpop.eup %1178 }
 0x9cf   :  { %v902_v24 = vmul.f32 %v1179_v21, %v886_v7 }
 0x9d0   :  { %v1181_v27 = vpop.eup %1180 }
 0x9d1   :  { %v908_v28 = vmul.f32 %v907_v19, %v902_v24  ;;  %v903_v29 = vmul.f32 %v1181_v27, %v887_v17 }
 0x9d3   :  { %v909_v30 = vmul.f32 %v907_v19, %v903_v29  ;;  %v914_v31 = vadd.f32 %v913_v22, %v908_v28 }
 0x9d5   :  { %v915_v32 = vadd.f32 %v913_v22, %v909_v30  ;;  %v916_v33 = vmax.f32 %v914_v31, 0.0 }
 0x9d7   :  { %v917_v34 = vmax.f32 %v915_v32, 0.0  ;;  %918 = vst.msk [vmem:[#allocation5] sm:$0xff] %vm141_vm3, %v916_v33 }
 0x9d9   :  { %919 = vst.msk [vmem:[#allocation5 + $0x8] sm:$0xff] %vm141_vm3, %v917_v34 }
 0x9da   :  { %1215 = shalt.err (!%p1212_p12)
}
 0x9db   :  { %s1216_s23 = scalar_lea.hbm %s1487_s7, 256 }
 0x9dc   :  { %p1217_p13 = scmp.ne.s32.totalorder %s1487_s7, %s1216_s23  ;;  %p1220_p0 = scmp.lt.u32.totalorder %s1216_s23, %s1487_s7 }
 0x9de   :  { %p1222_p1 = pnand %p1220_p0, %p1217_p13 }
 0x9e0   :  { %1225 = shalt.err (!%p1222_p1)
}
 0x9e1   :  { %s1236_s28 = smov 128   ;;  %s1237_s29 = smov 8  }
 0x9e2   :  { %931 = dma.vmem_to_hbm [thread:$0]  %s926_s20, 256, %s1487_s7, [#allocation4], %s1236_s28, %s1236_s28, %s1237_s29  }
 0x9e3   :  { %1228 = dma.done.wait [#allocation4], 256  }
 0x9e4   :  { %1229 = vsyncadd [#allocation4], 4294967040 }
 0x9e5   :  { %935 = vsyncpa [#allocation3], 1 }
 0x9e6   :  { %936 = vsyncpa [#allocation4], 1 }

</bundles_post_ra>
